<compile_context>
chip_gen: v7x
topology: tpu7x:2x2x1
jax: 0.10.0
libtpu: 0.0.40
codegen_flags: <defaults>
</compile_context>

<pallas_src>
import jax
import jax.numpy as jnp
from jax.experimental import pallas as pl
from jax.experimental.pallas import tpu as pltpu


def _make_kernel(x0, dx, dn, uncalib_val):
    inv_dx = 1.0 / dx

    def kernel(coef_ref, d_ref, uvcomp_ref, mask_ref, o_ref):
        # coef_ref   : SMEM f32[4, dn]     per-cell cubic polynomial coefficients
        # d_ref      : VMEM f32[1, TH, W]  raw depth tile (one batch element)
        # uvcomp_ref : VMEM f32[TH, W]     precomputed S(u, v)
        # mask_ref   : VMEM i32[TH, W]     per-pixel calibration bitmask
        # o_ref      : VMEM f32[1, TH, W]  undistorted depth
        d = d_ref[0]                                     # (TH, W)
        t = (d - x0) * inv_dx
        cell_f = jnp.floor(t)
        in_domain = jnp.logical_and(cell_f >= 0.0, cell_f < float(dn))
        # Out-of-domain / NaN depths map to cell == dn (<= 31); bit dn of the
        # bitmask is always 0, so the single bit test below also rejects them.
        # (Clamp before the int cast so NaN/huge never hit float->int UB.)
        cell_f = jnp.where(in_domain, cell_f, float(dn))
        cell = cell_f.astype(jnp.int32)
        u = t - cell_f

        # Hoist the SMEM scalar reads out of the select loop.
        p = [[coef_ref[j, k] for k in range(dn)] for j in range(4)]

        # Select per-cell polynomial coefficients: dn compares + 4*dn selects.
        # TODO(synk): bf16 pack_elementwise coefficient-pair selection (review
        # 5a) would cut ~12 VALU ops/elem but changes the spline numerics.
        p0 = jnp.zeros_like(d)
        p1 = jnp.zeros_like(d)
        p2 = jnp.zeros_like(d)
        p3 = jnp.zeros_like(d)
        for k in range(dn):
            m = cell == k
            p0 = jnp.where(m, p[0][k], p0)
            p1 = jnp.where(m, p[1][k], p1)
            p2 = jnp.where(m, p[2][k], p2)
            p3 = jnp.where(m, p[3][k], p3)

        # Single Horner evaluation of the cubic, then S(u,v) scaling.
        d_comp = ((p3 * u + p2) * u + p1) * u + p0
        undist = d_comp * uvcomp_ref[...]

        # Calibration check via the packed bitmask (shift amount <= dn <= 31).
        bit = jnp.bitwise_and(jnp.right_shift(mask_ref[...], cell), 1)
        o_ref[0] = jnp.where(bit != 0, undist, jnp.float32(uncalib_val))

    return kernel


def _choose_row_tile(H, W, target_bytes=2 << 20, cap_bytes=4 << 20):
    """Pick the row-tile height TH.

    Returns (TH, needs_pad).  Prefers a multiple-of-8 divisor of H close to
    ~`target_bytes` per (TH, W) f32 tile, so no padding of the depth tensor is
    needed.  Falls back to a full-H block (if it fits `cap_bytes`), or to
    padding as a last resort.
    """
    row_bytes = W * 4
    target_rows = max(8, (target_bytes // row_bytes) // 8 * 8)
    if H % 8 == 0:
        best = 8
        limit = min(H, target_rows)
        for th in range(8, limit + 1, 8):
            if H % th == 0:
                best = th
        return best, False
    if H * row_bytes <= cap_bytes:
        return H, False            # full-extent row block (allowed by (8,128) rule)
    return min(target_rows, ((H + 7) // 8) * 8), True


def uv_d_undistort(d_map, c, uv_comp, u_cell_ids, v_cell_ids, cell_is_calib,
                   *, x0, dx, uncalib_val=float('nan')):
    """Pallas implementation of UvDUndistortionModel.forward.

    d_map: [**, H, W] float32.  Returns [**, H, W] float32.
    """
    H, W = d_map.shape[-2:]
    lead = d_map.shape[:-2]
    d_flat = d_map.reshape((-1, H, W)).astype(jnp.float32)
    B = d_flat.shape[0]
    un, vn, dn = cell_is_calib.shape
    if dn > 31:
        # Bit dn must stay below the int32 sign bit and shifts must stay < 32.
        raise ValueError("dn > 31 not supported by the packed-bitmask path")

    # ---- parameter setup (plain JAX glue, once per call) --------------------
    # Per-pixel calibration bitmask: bit k = cell_is_calib[u_id, v_id, k],
    # whole word zeroed for uncalibrated (-1) pixels.
    u_safe = jnp.clip(u_cell_ids, 0, un - 1).astype(jnp.int32)
    v_safe = jnp.clip(v_cell_ids, 0, vn - 1).astype(jnp.int32)
    calib = cell_is_calib[u_safe, v_safe, :].astype(jnp.int32)        # [H, W, dn]
    mask = jnp.sum(calib << jnp.arange(dn, dtype=jnp.int32), axis=-1)
    mask = jnp.where((u_cell_ids != -1) & (v_cell_ids != -1), mask, 0)
    mask = mask.astype(jnp.int32)
    # TODO(synk): int8/int16 mask + bf16 uv_comp for the HBM-bound B==1 case
    # (v5e) to shrink the shared per-pixel tables.

    # Per-cell cubic polynomial coefficients from the B-spline control points:
    # S(d) = p0 + p1*u + p2*u^2 + p3*u^3 within cell k, u = (d - x0)/dx - k.
    cf = c.astype(jnp.float32)
    c0, c1, c2, c3 = cf[:dn], cf[1:dn + 1], cf[2:dn + 2], cf[3:dn + 3]
    coefs = jnp.stack([
        (c0 + 4.0 * c1 + c2) * (1.0 / 6.0),
        (c2 - c0) * 0.5,
        (c0 - 2.0 * c1 + c2) * 0.5,
        (c3 - c0 + 3.0 * (c1 - c2)) * (1.0 / 6.0),
    ], axis=0)                                                        # [4, dn]

    uvc = uv_comp.astype(jnp.float32)

    # ---- tiling: full-width blocks, ~2 MiB row tiles, no pad round trip -----
    TH, needs_pad = _choose_row_tile(H, W)
    if needs_pad:
        # TODO(synk): replace with an overlapping/clamped row window instead of
        # this pad/slice HBM round trip (rare: H % 8 != 0 and full-H too big).
        H_pad = -(-H // TH) * TH
        pad_h = H_pad - H
        d_flat = jnp.pad(d_flat, ((0, 0), (0, pad_h), (0, 0)))
        uvc = jnp.pad(uvc, ((0, pad_h), (0, 0)))
        mask = jnp.pad(mask, ((0, pad_h), (0, 0)))
    else:
        H_pad = H
    R = H_pad // TH

    tile_bytes = TH * W * 4
    # 4 pipelined arrays (d, uv_comp, mask, out) x 2 buffers each + headroom,
    # capped at 48 MiB so it also fits v7x's 64 MiB VMEM per TensorCore.
    vmem_limit = int(min(48 << 20, max(32 << 20, 8 * tile_bytes + (8 << 20))))

    kernel = _make_kernel(float(x0), float(dx), int(dn), float(uncalib_val))

    out = pl.pallas_call(
        kernel,
        out_shape=jax.ShapeDtypeStruct((B, H_pad, W), jnp.float32),
        grid_spec=pltpu.PrefetchScalarGridSpec(
            num_scalar_prefetch=0,
            # Batch is the inner axis so uv_comp / mask row tiles are only
            # re-fetched when the row tile index changes.
            grid=(R, B),
            in_specs=[
                pl.BlockSpec(memory_space=pltpu.MemorySpace.SMEM),    # coefs
                pl.BlockSpec((1, TH, W), lambda r, b: (b, r, 0)),     # d_map
                pl.BlockSpec((TH, W), lambda r, b: (r, 0)),           # uv_comp
                pl.BlockSpec((TH, W), lambda r, b: (r, 0)),           # mask
            ],
            out_specs=pl.BlockSpec((1, TH, W), lambda r, b: (b, r, 0)),
        ),
        compiler_params=pltpu.CompilerParams(
            # Row axis parallel (megacore split lands here on v7x), batch axis
            # arbitrary so each core keeps the (r fixed, b inner) reuse order.
            dimension_semantics=("parallel", "arbitrary"),
            vmem_limit_bytes=vmem_limit),
    )(coefs, d_flat, uvc, mask)

    if needs_pad:
        out = out[:, :H]
    return out.reshape(lead + (H, W))


def _reference(d_map, c, uv_comp, u_cell_ids, v_cell_ids, cell_is_calib,
               *, x0, dx, uncalib_val=float('nan')):
    """Pure-JAX reference mirroring the PyTorch forward (basis formulation)."""
    dn = cell_is_calib.shape[-1]
    t = (d_map - x0) / dx
    cell = jnp.floor(t).astype(jnp.int32)
    d_valid = (cell >= 0) & (cell < dn)
    cell_c = jnp.clip(cell, 0, dn - 1)
    u = t - cell_c.astype(jnp.float32)
    u2, u3 = u * u, u * u * u
    b0 = (1.0 - 3.0 * u + 3.0 * u2 - u3) / 6.0
    b1 = (3.0 * u3 - 6.0 * u2 + 4.0) / 6.0
    b2 = (-3.0 * u3 + 3.0 * u2 + 3.0 * u + 1.0) / 6.0
    b3 = u3 / 6.0
    d_comp = b0 * c[cell_c] + b1 * c[cell_c + 1] + b2 * c[cell_c + 2] + b3 * c[cell_c + 3]
    undist = d_comp * uv_comp
    u_b, v_b, d_b = jnp.broadcast_arrays(u_cell_ids, v_cell_ids, cell_c)
    is_calib = cell_is_calib[jnp.clip(u_b, 0), jnp.clip(v_b, 0), d_b]
    is_calib = is_calib & (u_b != -1) & (v_b != -1) & d_valid
    return jnp.where(is_calib, undist, jnp.float32(uncalib_val))


if __name__ == "__main__":
    # Small deterministic setup.
    H, W = 16, 128          # spatial size
    un, vn, dn = 5, 4, 6    # uv / d spline cell counts
    x0, dx = 0.5, 0.25      # d_spline domain [0.5, 2.0)
    B = 2

    key = jax.random.PRNGKey(0)
    k1, k2, k3, k4 = jax.random.split(key, 4)

    # d_spline control points (dn + 3 for a cubic B-spline over dn cells).
    c = jax.random.uniform(k1, (dn + 3,), jnp.float32, 0.8, 1.2)
    # Precomputed uv compensation S(u, v).
    uv_comp = jax.random.uniform(k2, (H, W), jnp.float32, 0.9, 1.1)
    # Per-pixel uv cell ids; border pixels marked uncalibrated (-1).
    cols = jnp.arange(W)
    rows = jnp.arange(H)
    u_row = jnp.clip((cols * un) // W, 0, un - 1).astype(jnp.int32)
    v_col = jnp.clip((rows * vn) // H, 0, vn - 1).astype(jnp.int32)
    u_cell_ids = jnp.broadcast_to(u_row[None, :], (H, W))
    v_cell_ids = jnp.broadcast_to(v_col[:, None], (H, W))
    u_cell_ids = jnp.where((cols[None, :] < 2) | (cols[None, :] >= W - 2),
                           -1, u_cell_ids).astype(jnp.int32)
    v_cell_ids = jnp.where((rows[:, None] < 1) | (rows[:, None] >= H - 1),
                           -1, v_cell_ids).astype(jnp.int32)
    # Which (u, v, d) cells are calibrated.
    cell_is_calib = jax.random.bernoulli(k3, 0.8, (un, vn, dn))
    # Raw depth map, includes out-of-domain values.
    d_map = jax.random.uniform(k4, (B, H, W), jnp.float32, 0.3, 2.3)

    out = uv_d_undistort(d_map, c, uv_comp, u_cell_ids, v_cell_ids,
                         cell_is_calib, x0=x0, dx=dx)
    out = jax.block_until_ready(out)

    ref = _reference(d_map, c, uv_comp, u_cell_ids, v_cell_ids, cell_is_calib,
                     x0=x0, dx=dx)
    if not bool(jnp.allclose(out, ref, atol=1e-5, rtol=1e-5, equal_nan=True)):
        raise AssertionError("Pallas kernel does not match reference")

    print("KERNEL_OK")
</pallas_src>

<mosaic_0001>
module attributes {stable_mosaic.version = 11 : i64} {
  func.func @kernel(%arg0: i32, %arg1: i32, %arg2: memref<4x6xf32, #tpu.memory_space<smem>>, %arg3: memref<1x16x128xf32, #tpu.memory_space<vmem>>, %arg4: memref<16x128xf32, #tpu.memory_space<vmem>>, %arg5: memref<16x128xi32, #tpu.memory_space<vmem>>, %arg6: memref<1x16x128xf32, #tpu.memory_space<vmem>>) attributes {dimension_semantics = [#tpu.dimension_semantics<parallel>, #tpu.dimension_semantics<arbitrary>], iteration_bounds = array<i64: 1, 2>, scalar_prefetch = 0 : i64, scratch_operands = 0 : i64, tpu.core_type = #tpu.core_type<tc>, window_params = [{transform_indices = @transform_0, window_bounds = array<i64: 4, 6>}, {transform_indices = @transform_1, window_bounds = array<i64: 1, 16, 128>}, {transform_indices = @transform_2, window_bounds = array<i64: 16, 128>}, {transform_indices = @transform_3, window_bounds = array<i64: 16, 128>}, {transform_indices = @transform_4, window_bounds = array<i64: 1, 16, 128>}]} {
    %c0 = arith.constant 0 : index
    %c0_0 = arith.constant 0 : index
    %c0_1 = arith.constant 0 : index
    %0 = vector.load %arg3[%c0, %c0_0, %c0_1] : memref<1x16x128xf32, #tpu.memory_space<vmem>>, vector<1x16x128xf32>
    %1 = vector.shape_cast %0 : vector<1x16x128xf32> to vector<16x128xf32>
    %cst = arith.constant 5.000000e-01 : f32
    %2 = vector.broadcast %cst : f32 to vector<16x128xf32>
    %3 = arith.subf %1, %2 : vector<16x128xf32>
    %cst_2 = arith.constant 4.000000e+00 : f32
    %4 = vector.broadcast %cst_2 : f32 to vector<16x128xf32>
    %5 = arith.mulf %3, %4 : vector<16x128xf32>
    %6 = math.floor %5 : vector<16x128xf32>
    %cst_3 = arith.constant 0.000000e+00 : f32
    %7 = vector.broadcast %cst_3 : f32 to vector<16x128xf32>
    %8 = arith.cmpf oge, %6, %7 : vector<16x128xf32>
    %cst_4 = arith.constant 6.000000e+00 : f32
    %9 = vector.broadcast %cst_4 : f32 to vector<16x128xf32>
    %10 = arith.cmpf olt, %6, %9 : vector<16x128xf32>
    %11 = arith.andi %8, %10 : vector<16x128xi1>
    %cst_5 = arith.constant 6.000000e+00 : f32
    %12 = vector.broadcast %cst_5 : f32 to vector<16x128xf32>
    %13 = arith.select %11, %6, %12 : vector<16x128xi1>, vector<16x128xf32>
    %14 = arith.fptosi %13 : vector<16x128xf32> to vector<16x128xi32>
    %15 = arith.subf %5, %13 : vector<16x128xf32>
    %c0_6 = arith.constant 0 : index
    %c0_7 = arith.constant 0 : index
    %16 = memref.load %arg2[%c0_6, %c0_7] : memref<4x6xf32, #tpu.memory_space<smem>>
    %c0_8 = arith.constant 0 : index
    %c1 = arith.constant 1 : index
    %17 = memref.load %arg2[%c0_8, %c1] : memref<4x6xf32, #tpu.memory_space<smem>>
    %c0_9 = arith.constant 0 : index
    %c2 = arith.constant 2 : index
    %18 = memref.load %arg2[%c0_9, %c2] : memref<4x6xf32, #tpu.memory_space<smem>>
    %c0_10 = arith.constant 0 : index
    %c3 = arith.constant 3 : index
    %19 = memref.load %arg2[%c0_10, %c3] : memref<4x6xf32, #tpu.memory_space<smem>>
    %c0_11 = arith.constant 0 : index
    %c4 = arith.constant 4 : index
    %20 = memref.load %arg2[%c0_11, %c4] : memref<4x6xf32, #tpu.memory_space<smem>>
    %c0_12 = arith.constant 0 : index
    %c5 = arith.constant 5 : index
    %21 = memref.load %arg2[%c0_12, %c5] : memref<4x6xf32, #tpu.memory_space<smem>>
    %c1_13 = arith.constant 1 : index
    %c0_14 = arith.constant 0 : index
    %22 = memref.load %arg2[%c1_13, %c0_14] : memref<4x6xf32, #tpu.memory_space<smem>>
    %c1_15 = arith.constant 1 : index
    %c1_16 = arith.constant 1 : index
    %23 = memref.load %arg2[%c1_15, %c1_16] : memref<4x6xf32, #tpu.memory_space<smem>>
    %c1_17 = arith.constant 1 : index
    %c2_18 = arith.constant 2 : index
    %24 = memref.load %arg2[%c1_17, %c2_18] : memref<4x6xf32, #tpu.memory_space<smem>>
    %c1_19 = arith.constant 1 : index
    %c3_20 = arith.constant 3 : index
    %25 = memref.load %arg2[%c1_19, %c3_20] : memref<4x6xf32, #tpu.memory_space<smem>>
    %c1_21 = arith.constant 1 : index
    %c4_22 = arith.constant 4 : index
    %26 = memref.load %arg2[%c1_21, %c4_22] : memref<4x6xf32, #tpu.memory_space<smem>>
    %c1_23 = arith.constant 1 : index
    %c5_24 = arith.constant 5 : index
    %27 = memref.load %arg2[%c1_23, %c5_24] : memref<4x6xf32, #tpu.memory_space<smem>>
    %c2_25 = arith.constant 2 : index
    %c0_26 = arith.constant 0 : index
    %28 = memref.load %arg2[%c2_25, %c0_26] : memref<4x6xf32, #tpu.memory_space<smem>>
    %c2_27 = arith.constant 2 : index
    %c1_28 = arith.constant 1 : index
    %29 = memref.load %arg2[%c2_27, %c1_28] : memref<4x6xf32, #tpu.memory_space<smem>>
    %c2_29 = arith.constant 2 : index
    %c2_30 = arith.constant 2 : index
    %30 = memref.load %arg2[%c2_29, %c2_30] : memref<4x6xf32, #tpu.memory_space<smem>>
    %c2_31 = arith.constant 2 : index
    %c3_32 = arith.constant 3 : index
    %31 = memref.load %arg2[%c2_31, %c3_32] : memref<4x6xf32, #tpu.memory_space<smem>>
    %c2_33 = arith.constant 2 : index
    %c4_34 = arith.constant 4 : index
    %32 = memref.load %arg2[%c2_33, %c4_34] : memref<4x6xf32, #tpu.memory_space<smem>>
    %c2_35 = arith.constant 2 : index
    %c5_36 = arith.constant 5 : index
    %33 = memref.load %arg2[%c2_35, %c5_36] : memref<4x6xf32, #tpu.memory_space<smem>>
    %c3_37 = arith.constant 3 : index
    %c0_38 = arith.constant 0 : index
    %34 = memref.load %arg2[%c3_37, %c0_38] : memref<4x6xf32, #tpu.memory_space<smem>>
    %c3_39 = arith.constant 3 : index
    %c1_40 = arith.constant 1 : index
    %35 = memref.load %arg2[%c3_39, %c1_40] : memref<4x6xf32, #tpu.memory_space<smem>>
    %c3_41 = arith.constant 3 : index
    %c2_42 = arith.constant 2 : index
    %36 = memref.load %arg2[%c3_41, %c2_42] : memref<4x6xf32, #tpu.memory_space<smem>>
    %c3_43 = arith.constant 3 : index
    %c3_44 = arith.constant 3 : index
    %37 = memref.load %arg2[%c3_43, %c3_44] : memref<4x6xf32, #tpu.memory_space<smem>>
    %c3_45 = arith.constant 3 : index
    %c4_46 = arith.constant 4 : index
    %38 = memref.load %arg2[%c3_45, %c4_46] : memref<4x6xf32, #tpu.memory_space<smem>>
    %c3_47 = arith.constant 3 : index
    %c5_48 = arith.constant 5 : index
    %39 = memref.load %arg2[%c3_47, %c5_48] : memref<4x6xf32, #tpu.memory_space<smem>>
    %cst_49 = arith.constant 0.000000e+00 : f32
    %40 = vector.broadcast %cst_49 : f32 to vector<16x128xf32>
    %cst_50 = arith.constant 0.000000e+00 : f32
    %41 = vector.broadcast %cst_50 : f32 to vector<16x128xf32>
    %cst_51 = arith.constant 0.000000e+00 : f32
    %42 = vector.broadcast %cst_51 : f32 to vector<16x128xf32>
    %cst_52 = arith.constant 0.000000e+00 : f32
    %43 = vector.broadcast %cst_52 : f32 to vector<16x128xf32>
    %c0_i32 = arith.constant 0 : i32
    %44 = vector.broadcast %c0_i32 : i32 to vector<16x128xi32>
    %45 = arith.cmpi eq, %14, %44 : vector<16x128xi32>
    %46 = vector.broadcast %16 : f32 to vector<16x128xf32>
    %47 = arith.select %45, %46, %40 : vector<16x128xi1>, vector<16x128xf32>
    %48 = vector.broadcast %22 : f32 to vector<16x128xf32>
    %49 = arith.select %45, %48, %41 : vector<16x128xi1>, vector<16x128xf32>
    %50 = vector.broadcast %28 : f32 to vector<16x128xf32>
    %51 = arith.select %45, %50, %42 : vector<16x128xi1>, vector<16x128xf32>
    %52 = vector.broadcast %34 : f32 to vector<16x128xf32>
    %53 = arith.select %45, %52, %43 : vector<16x128xi1>, vector<16x128xf32>
    %c1_i32 = arith.constant 1 : i32
    %54 = vector.broadcast %c1_i32 : i32 to vector<16x128xi32>
    %55 = arith.cmpi eq, %14, %54 : vector<16x128xi32>
    %56 = vector.broadcast %17 : f32 to vector<16x128xf32>
    %57 = arith.select %55, %56, %47 : vector<16x128xi1>, vector<16x128xf32>
    %58 = vector.broadcast %23 : f32 to vector<16x128xf32>
    %59 = arith.select %55, %58, %49 : vector<16x128xi1>, vector<16x128xf32>
    %60 = vector.broadcast %29 : f32 to vector<16x128xf32>
    %61 = arith.select %55, %60, %51 : vector<16x128xi1>, vector<16x128xf32>
    %62 = vector.broadcast %35 : f32 to vector<16x128xf32>
    %63 = arith.select %55, %62, %53 : vector<16x128xi1>, vector<16x128xf32>
    %c2_i32 = arith.constant 2 : i32
    %64 = vector.broadcast %c2_i32 : i32 to vector<16x128xi32>
    %65 = arith.cmpi eq, %14, %64 : vector<16x128xi32>
    %66 = vector.broadcast %18 : f32 to vector<16x128xf32>
    %67 = arith.select %65, %66, %57 : vector<16x128xi1>, vector<16x128xf32>
    %68 = vector.broadcast %24 : f32 to vector<16x128xf32>
    %69 = arith.select %65, %68, %59 : vector<16x128xi1>, vector<16x128xf32>
    %70 = vector.broadcast %30 : f32 to vector<16x128xf32>
    %71 = arith.select %65, %70, %61 : vector<16x128xi1>, vector<16x128xf32>
    %72 = vector.broadcast %36 : f32 to vector<16x128xf32>
    %73 = arith.select %65, %72, %63 : vector<16x128xi1>, vector<16x128xf32>
    %c3_i32 = arith.constant 3 : i32
    %74 = vector.broadcast %c3_i32 : i32 to vector<16x128xi32>
    %75 = arith.cmpi eq, %14, %74 : vector<16x128xi32>
    %76 = vector.broadcast %19 : f32 to vector<16x128xf32>
    %77 = arith.select %75, %76, %67 : vector<16x128xi1>, vector<16x128xf32>
    %78 = vector.broadcast %25 : f32 to vector<16x128xf32>
    %79 = arith.select %75, %78, %69 : vector<16x128xi1>, vector<16x128xf32>
    %80 = vector.broadcast %31 : f32 to vector<16x128xf32>
    %81 = arith.select %75, %80, %71 : vector<16x128xi1>, vector<16x128xf32>
    %82 = vector.broadcast %37 : f32 to vector<16x128xf32>
    %83 = arith.select %75, %82, %73 : vector<16x128xi1>, vector<16x128xf32>
    %c4_i32 = arith.constant 4 : i32
    %84 = vector.broadcast %c4_i32 : i32 to vector<16x128xi32>
    %85 = arith.cmpi eq, %14, %84 : vector<16x128xi32>
    %86 = vector.broadcast %20 : f32 to vector<16x128xf32>
    %87 = arith.select %85, %86, %77 : vector<16x128xi1>, vector<16x128xf32>
    %88 = vector.broadcast %26 : f32 to vector<16x128xf32>
    %89 = arith.select %85, %88, %79 : vector<16x128xi1>, vector<16x128xf32>
    %90 = vector.broadcast %32 : f32 to vector<16x128xf32>
    %91 = arith.select %85, %90, %81 : vector<16x128xi1>, vector<16x128xf32>
    %92 = vector.broadcast %38 : f32 to vector<16x128xf32>
    %93 = arith.select %85, %92, %83 : vector<16x128xi1>, vector<16x128xf32>
    %c5_i32 = arith.constant 5 : i32
    %94 = vector.broadcast %c5_i32 : i32 to vector<16x128xi32>
    %95 = arith.cmpi eq, %14, %94 : vector<16x128xi32>
    %96 = vector.broadcast %21 : f32 to vector<16x128xf32>
    %97 = arith.select %95, %96, %87 : vector<16x128xi1>, vector<16x128xf32>
    %98 = vector.broadcast %27 : f32 to vector<16x128xf32>
    %99 = arith.select %95, %98, %89 : vector<16x128xi1>, vector<16x128xf32>
    %100 = vector.broadcast %33 : f32 to vector<16x128xf32>
    %101 = arith.select %95, %100, %91 : vector<16x128xi1>, vector<16x128xf32>
    %102 = vector.broadcast %39 : f32 to vector<16x128xf32>
    %103 = arith.select %95, %102, %93 : vector<16x128xi1>, vector<16x128xf32>
    %104 = arith.mulf %103, %15 : vector<16x128xf32>
    %105 = arith.addf %104, %101 : vector<16x128xf32>
    %106 = arith.mulf %105, %15 : vector<16x128xf32>
    %107 = arith.addf %106, %99 : vector<16x128xf32>
    %108 = arith.mulf %107, %15 : vector<16x128xf32>
    %109 = arith.addf %108, %97 : vector<16x128xf32>
    %c0_53 = arith.constant 0 : index
    %c0_54 = arith.constant 0 : index
    %110 = vector.load %arg4[%c0_53, %c0_54] : memref<16x128xf32, #tpu.memory_space<vmem>>, vector<16x128xf32>
    %111 = arith.mulf %109, %110 : vector<16x128xf32>
    %c0_55 = arith.constant 0 : index
    %c0_56 = arith.constant 0 : index
    %112 = vector.load %arg5[%c0_55, %c0_56] : memref<16x128xi32, #tpu.memory_space<vmem>>, vector<16x128xi32>
    %113 = arith.shrsi %112, %14 : vector<16x128xi32>
    %c1_i32_57 = arith.constant 1 : i32
    %114 = vector.broadcast %c1_i32_57 : i32 to vector<16x128xi32>
    %115 = arith.andi %113, %114 : vector<16x128xi32>
    %c0_i32_58 = arith.constant 0 : i32
    %116 = vector.broadcast %c0_i32_58 : i32 to vector<16x128xi32>
    %117 = arith.cmpi ne, %115, %116 : vector<16x128xi32>
    %cst_59 = arith.constant 0x7FC00000 : f32
    %118 = vector.broadcast %cst_59 : f32 to vector<16x128xf32>
    %119 = arith.select %117, %111, %118 : vector<16x128xi1>, vector<16x128xf32>
    %c0_60 = arith.constant 0 : index
    %c0_61 = arith.constant 0 : index
    %c0_62 = arith.constant 0 : index
    %120 = vector.load %arg6[%c0_60, %c0_61, %c0_62] : memref<1x16x128xf32, #tpu.memory_space<vmem>>, vector<1x16x128xf32>
    %121 = vector.shape_cast %120 : vector<1x16x128xf32> to vector<16x128xf32>
    %122 = vector.shape_cast %119 : vector<16x128xf32> to vector<1x16x128xf32>
    tpu.vector_store %arg6[%c0_60, %c0_61, %c0_62], %122 {strides = array<i32>} : memref<1x16x128xf32, #tpu.memory_space<vmem>>, vector<1x16x128xf32>,
    return
  }
  func.func @transform_0(%arg0: i32, %arg1: i32) -> (i32, i32) {
    %c0_i32 = arith.constant 0 : i32
    %c0_i32_0 = arith.constant 0 : i32
    %c0_i32_1 = arith.constant 0 : i32
    return %c0_i32, %c0_i32_0 : i32, i32
  }
  func.func @transform_1(%arg0: i32, %arg1: i32) -> (i32, i32, i32) {
    %c0_i32 = arith.constant 0 : i32
    %c0_i32_0 = arith.constant 0 : i32
    return %arg1, %arg0, %c0_i32 : i32, i32, i32
  }
  func.func @transform_2(%arg0: i32, %arg1: i32) -> (i32, i32) {
    %c0_i32 = arith.constant 0 : i32
    %c0_i32_0 = arith.constant 0 : i32
    return %arg0, %c0_i32 : i32, i32
  }
  func.func @transform_3(%arg0: i32, %arg1: i32) -> (i32, i32) {
    %c0_i32 = arith.constant 0 : i32
    %c0_i32_0 = arith.constant 0 : i32
    return %arg0, %c0_i32 : i32, i32
  }
  func.func @transform_4(%arg0: i32, %arg1: i32) -> (i32, i32, i32) {
    %c0_i32 = arith.constant 0 : i32
    %c0_i32_0 = arith.constant 0 : i32
    return %arg1, %arg0, %c0_i32 : i32, i32, i32
  }
}

</mosaic_0001>

<bundles_post_ra>
// kernel: tpu_custom_call.1
= control target key start
LH: loop header
LB: loop body
LE: loop exit
PB: predicated region body
PF: predicated region fallthrough
CT: control target
= control target key end

     0   :  { %s1440_s0 = inlined_call_operand.hbm [shape: f32[4,6], index: 0, kind: input, shape index: {}]   ;;  %s1441_s1 = inlined_call_operand.hbm [shape: f32[2,16,128], index: 1, kind: input, shape index: {}]   ;;  %s1442_s2 = inlined_call_operand.hbm [shape: f32[16,128], index: 2, kind: input, shape index: {}]   ;;  %s1443_s3 = inlined_call_operand.hbm [shape: s32[16,128], index: 3, kind: input, shape index: {}]   ;;  %s1444_s4 = inlined_call_operand.hbm [shape: f32[2,16,128], index: 4, kind: output, shape index: {}]  }
   0x1   :  { %1453 = sst [smem:[#allocation19_spill]] %s1440_s0 }
   0x2   :  { %1454 = sst [smem:[#allocation20_spill]] %s1441_s1 }
   0x3   :  { %1455 = sst [smem:[#allocation21_spill]] %s1442_s2 }
   0x4   :  { %1456 = sst [smem:[#allocation22_spill]] %s1443_s3 }
   0x5   :  { %9 = vsyncpa [#allocation5], 0 }
   0x6   :  { %10 = vsyncpa [#allocation3], 0 }
   0x7   :  { %12 = vsyncpa [#allocation3 + $0x1], 0 }
   0x8   :  { %13 = vsyncpa [#allocation8], 0 }
   0x9   :  { %14 = vsyncpa [#allocation4], 0 }
   0xa   :  { %16 = vsyncpa [#allocation4 + $0x1], 0  ;;  %s963_s15 = smov 0   ;;  %s965_s16 = smov 0  }
   0xb   :  { %s967_s17 = smov 0   ;;  %s969_s18 = smov 0  }
   0xc   :  { %s971_s19 = smov 0   ;;  %s973_s20 = smov 0  }
   0xd LB: > { %1457 = sst [smem:[#allocation15_spill]] %s923_s19  ;;  %s589_s21 = sadd.s32 4294967295, %s927_s20   ;;  %s927_s20 = sphi %s973_s20, %s22_s20   ;;  %s923_s19 = sphi %s971_s19, %s1486_s19   ;;  %s919_s18 = sphi %s969_s18, %s1485_s18   ;;  %s915_s17 = sphi %s967_s17, %s1489_s17   ;;  %s911_s16 = sphi %s965_s16, %s1488_s16   ;;  %s907_s15 = sphi %s963_s15, %s1487_s15  }
   0xe   : > { %s590_s22 = sadd.s32 4294967294, %s927_s20   ;;  %p77_p0 = scmp.ne.s32.totalorder %s911_s16, %s907_s15 }
   0xf   : > { %p997_p1 = scmp.eq.s32.totalorder %s589_s21, 0  ;;  %p1001_p2 = scmp.eq.s32.totalorder %s589_s21, 1 }
  0x10   : > { %p161_p3 = scmp.eq.s32.totalorder %s590_s22, 1  ;;  %p591_p5 = scmp.ge.s32.totalorder %s927_s20, 1 }
  0x11   : > { %s1458_s23 = scalar_select %p997_p1, 1, 0 }
  0x12   : > { %s1459_s24 = scalar_select %p1001_p2, 1, 0 }
  0x13   : > { %p1007_p4 = por %p997_p1, %p77_p0  ;;  %p1012_p6 = por %p161_p3, %p77_p0 }
  0x14   : > { %p168_p7 = scmp.lt.s32.totalorder %s927_s20, 3  ;;  %s929_s28 = smov [#allocation7]  }
  0x15   : > { %s1460_s25 = scalar_select %p1007_p4, 1, 0 }
  0x16   : > { %s1461_s26 = scalar_select %p1012_p6, 1, 0 }
  0x17   : > { %p1017_p8 = pnand %p591_p5, %p168_p7  ;;  %s192_s29 = sshll.u32 %s929_s28, 4  ;;  %s193_s29 = int_to_ptr.vmem [resolvable:$true] %s192_s29 }
  0x18   : > { %1462 = sst [smem:[#allocation16_spill]] %s1461_s26  ;;  %s930_s5 = smov [#allocation9]  }
  0x19   : > { %s1463_s27 = scalar_select %p1017_p8, 1, 0 }
  0x1a   : > { %p657_p9 = pneg %p1017_p8  ;;  %s1030_s6 = sshll.u32 %s930_s5, 4  ;;  %s209_s6 = int_to_ptr.vmem [resolvable:$true] %s1030_s6 }
  0x1b   : > { %s1465_s2 = sld [smem:[#allocation21_spill]] }
  0x1c   : > { %p1026_p11 = pnand %p657_p9, %p997_p1 }
  0x1e   : > { %p1040_p13 = pneg %p1026_p11 }
  0x21   : > { %s738_s9 = scalar_lea.hbm %s1465_s2, 256 }
  0x22   : > { %p739_p12 = scmp.ne.s32.totalorder %s1465_s2, %s738_s9  ;;  %p745_p5 = scmp.lt.u32.totalorder %s738_s9, %s1465_s2 }
  0x24   : > { %p741_p0 = pnand %p1040_p13, %p739_p12 }
  0x26   : > { %p742_p3 = pneg %p741_p0 }
  0x28   : > { %p747_p7 = pnand %p745_p5, %p742_p3 }
  0x2a   : > { %750 = shalt.err (!%p747_p7)
}
  0x2b   : > { %s751_s21 = scalar_lea.vmem %s193_s29, 256  ;;  %p759_p4 = scmp.lt.s32.totalorder %s193_s29, %s193_s29 }
  0x2c   : > { %p752_p9 = scmp.ne.s32.totalorder %s193_s29, %s751_s21  ;;  %p760_p1 = scmp.lt.s32.totalorder %s751_s21, %s751_s21 }
  0x2e   : > { %p754_p10 = pnand %p752_p9, %p1040_p13  ;;  %p761_p8 = por %p760_p1, %p759_p4 }
  0x30   : > { %p755_p6 = pneg %p754_p10 }
  0x32   : > { %p762_p2 = pnand %p761_p8, %p755_p6 }
  0x34   : > { %765 = shalt.err (!%p762_p2)
}
  0x35   : > { %s931_s22 = smov 128   ;;  %s932_s28 = smov 8  }
  0x36   : > { %663 = dma.hbm_to_vmem [thread:$0]  (!%p1026_p11), %s1465_s2, 256, %s193_s29, [#allocation8], %s931_s22, %s931_s22, %s932_s28  }
  0x37   : > { %s1467_s0 = sld [smem:[#allocation19_spill]] }
  0x3d   : > { %s766_s10 = scalar_lea.hbm %s1467_s0, 64 }
  0x3e   : > { %p767_p1 = scmp.ne.s32.totalorder %s1467_s0, %s766_s10  ;;  %p773_p6 = scmp.lt.u32.totalorder %s766_s10, %s1467_s0 }
  0x40   : > { %p769_p2 = pnand %p767_p1, %p1040_p13 }
  0x42   : > { %p770_p4 = pneg %p769_p2 }
  0x44   : > { %p775_p8 = pnand %p773_p6, %p770_p4 }
  0x46   : > { %778 = shalt.err (!%p775_p8)
}
  0x47   : > { %s933_s26 = smov [#allocation2]   ;;  %s1468_s3 = sld [smem:[#allocation22_spill]] }
  0x48   : > { %660 = dma.hbm_to_smem (!%p1026_p11), %s1467_s0, 64, %s933_s26, [#allocation5]  }
  0x4d   : > { %s779_s9 = scalar_lea.hbm %s1468_s3, 256 }
  0x4e   : > { %p780_p10 = scmp.ne.s32.totalorder %s1468_s3, %s779_s9  ;;  %p786_p3 = scmp.lt.u32.totalorder %s779_s9, %s1468_s3 }
  0x50   : > { %p782_p12 = pnand %p780_p10, %p1040_p13 }
  0x52   : > { %p783_p0 = pneg %p782_p12 }
  0x54   : > { %p788_p5 = pnand %p786_p3, %p783_p0 }
  0x56   : > { %791 = shalt.err (!%p788_p5)
}
  0x57   : > { %s792_s21 = scalar_lea.vmem %s209_s6, 256  ;;  %p800_p2 = scmp.lt.s32.totalorder %s209_s6, %s209_s6 }
  0x58   : > { %p793_p7 = scmp.ne.s32.totalorder %s209_s6, %s792_s21  ;;  %p801_p4 = scmp.lt.s32.totalorder %s792_s21, %s792_s21 }
  0x5a   : > { %p795_p9 = pnand %p793_p7, %p1040_p13  ;;  %p802_p6 = por %p801_p4, %p800_p2 }
  0x5c   : > { %p796_p1 = pneg %p795_p9 }
  0x5e   : > { %p803_p8 = pnand %p802_p6, %p796_p1 }
  0x60   : > { %806 = shalt.err (!%p803_p8)
}
  0x61   : > { %666 = dma.hbm_to_vmem [thread:$0]  (!%p1026_p11), %s1468_s3, 256, %s209_s6, [#allocation8], %s931_s22, %s931_s22, %s932_s28  }
  0x62   : > { %s64_s12 = sadd.s32 1, %s915_s17  ;;  %s31_s30 = sadd.s32 1, %s923_s19 }
  0x63   : > { %p71_p13 = scmp.ne.s32.totalorder %s915_s17, %s911_s16  ;;  %p32_p10 = scmp.ge.s32.totalorder %s31_s30, 2 }
  0x64   : > { %p72_p12 = scmp.eq.s32.totalorder %s927_s20, 0  ;;  %p1469_p0 = scmp.ne.s32.totalorder %s1459_s24, 0 }
  0x65   : > { %p678_p5 = scmp.lt.s32.totalorder %s927_s20, 2  ;;  %s1491_s30 = smov (%p32_p10, %s31_s30), 0 }
  0x66   : > { %p1104_p3 = por %p1469_p0, %p71_p13  ;;  %1471 = sst [smem:[#allocation17_spill]] %s1491_s30 }
  0x67   : > { %p73_p7 = por %p72_p12, %p71_p13  ;;  %s222_s7 = sand.u32 1, %s915_s17  }
  0x68   : > { %s59_s8 = ssub.s32 %s923_s19, %s1491_s30  ;;  %s596_s6 = sshll.u32 %s222_s7, 4 }
  0x69   : > { %p62_p9 = scmp.eq.s32.totalorder %s59_s8, 0  ;;  %s635_s9 = sshll.u32 %s923_s19, 8 }
  0x6a   : > { %s1473_s1 = sld [smem:[#allocation20_spill]]  ;;  %s226_s14 = scalar_lea.vmem [#allocation6], %s596_s6 }
  0x6b   : > { %s1116_s11 = scalar_select %p62_p9, %s915_s17, %s64_s12  }
  0x6c   : > { %s235_s21 = sshll.u32 %s226_s14, 4  ;;  %p1127_p11 = pnand %p678_p5, %p73_p7  ;;  %s1123_s21 = int_to_ptr.vmem [resolvable:$true] %s235_s21 }
  0x6d   : > { %1472 = sst [smem:[#allocation18_spill]] %s1116_s11  ;;  %s1131_s29 = scalar_lea.sflag [#allocation3], %s222_s7 }
  0x6e   : > { %p809_p2 = pneg %p1127_p11 }
  0x70   : > { %s1121_s24 = scalar_lea.hbm %s1473_s1, %s635_s9  ;;  %s812_s9 = scalar_lea.hbm %s1473_s1, 512 }
  0x71   : > { %s807_s12 = scalar_lea.hbm %s1121_s24, 256  ;;  %p813_p8 = scmp.lt.u32.totalorder %s1121_s24, %s1473_s1 }
  0x72   : > { %p808_p1 = scmp.ne.s32.totalorder %s1121_s24, %s807_s12  ;;  %p814_p13 = scmp.lt.u32.totalorder %s812_s9, %s807_s12 }
  0x73   : > { %p816_p12 = scmp.lt.u32.totalorder %s807_s12, %s1121_s24 }
  0x74   : > { %p810_p4 = pnand %p809_p2, %p808_p1  ;;  %p815_p10 = por %p814_p13, %p813_p8 }
  0x76   : > { %p811_p6 = pneg %p810_p4  ;;  %p817_p0 = por %p816_p12, %p815_p10 }
  0x78   : > { %p818_p5 = pnand %p817_p0, %p811_p6 }
  0x7a   : > { %821 = shalt.err (!%p818_p5)
}
  0x7b   : > { %s822_s7 = scalar_lea.vmem %s1123_s21, 256  ;;  %s934_s14 = smov [#allocation6]  }
  0x7c   : > { %p823_p7 = scmp.ne.s32.totalorder %s1123_s21, %s822_s7  ;;  %s827_s8 = sshll.u32 %s934_s14, 4  ;;  %s828_s8 = int_to_ptr.vmem [resolvable:$false] %s827_s8 }
  0x7d   : > { %s829_s6 = scalar_lea.vmem %s828_s8, 512  ;;  %p830_p4 = scmp.lt.s32.totalorder %s1123_s21, %s828_s8 }
  0x7e   : > { %p825_p9 = pnand %p823_p7, %p809_p2  ;;  %p831_p8 = scmp.lt.s32.totalorder %s829_s6, %s822_s7 }
  0x80   : > { %p826_p1 = pneg %p825_p9  ;;  %p832_p13 = por %p831_p8, %p830_p4 }
  0x82   : > { %p833_p10 = pnand %p832_p13, %p826_p1 }
  0x84   : > { %836 = shalt.err (!%p833_p10)
}
  0x85   : > { %670 = dma.hbm_to_vmem [thread:$0]  (!%p1127_p11), %s1121_s24, 256, %s1123_s21, %s1131_s29, %s931_s22, %s931_s22, %s932_s28  }
  0x86   : > { %p1475_p2 = scmp.ne.s32.totalorder %s1463_s27, 0 }
  0x87   : > { %p1476_p6 = scmp.ne.s32.totalorder (!%p1475_p2), %s1458_s23, 0 }
  0x88   : > { %247 = sbr.rel (%p1475_p2) target bundleno = 214 (0xd6), region = 36 }
  0x8f   : > { %890 = dma.done.wait (%p1476_p6), [#allocation5], 64  }
  0x90   : > { %892 = vsyncadd (%p1476_p6), [#allocation5], 4294967232  ;;  %s1169_s12 = sand.u32 1, %s911_s16   ;;  %p1477_p11 = scmp.ne.s32.totalorder %s1460_s25, 0 }
  0x91   : > { %s1450_s26 = sshll.u32 %s1169_s12, 4  ;;  %s254_s9 = scalar_lea.sflag [#allocation3], %s1169_s12 }
  0x92   : > { %s257_s22 = scalar_lea.vmem [#allocation6], %s1450_s26 }
  0x93   : > { %894 = dma.done.wait (%p1477_p11), %s254_s9, 256  }
  0x94   : > { %896 = vsyncadd (%p1477_p11), %s254_s9, 4294967040 }
  0x95   : > { %898 = dma.done.wait (%p1476_p6), [#allocation8], 512  }
  0x96   : > { %900 = vsyncadd (%p1476_p6), [#allocation8], 4294966784 }
  0x97   : > { %270 = sfence }
  0x98   : > { %v295_v0 = vld [vmem:[%s257_s22] sm:$0xff]  ;;  %s1183_s27 = sld [smem:[#allocation2]]  ;;  %v296_v2 = vld [vmem:[%s257_s22 + $0x8] sm:$0xff]  ;;  %s1185_s28 = sld [smem:[#allocation2 + $0x1]] }
  0x99   : > { %v605_v1 = vadd.f32 -0.5, %v295_v0  ;;  %s1187_s24 = sld [smem:[#allocation2 + $0x2]]  ;;  %v606_v3 = vadd.f32 -0.5, %v296_v2  ;;  %s1189_s25 = sld [smem:[#allocation2 + $0x3]]  ;;  %v439_v61 = vld [vmem:[#allocation9] sm:$0xff] }
  0x9a   : > { %s1191_s21 = sld [smem:[#allocation2 + $0x80]]  ;;  %s1193_s29 = sld [smem:[#allocation2 + $0x81]] }
  0x9b   : > { %v299_v4 = vmul.f32 4.0, %v605_v1  ;;  %v1195_v5 = vmul.f32 4.0, %v606_v3  ;;  %s1197_s23 = sld [smem:[#allocation2 + $0x82]]  ;;  %s1199_s13 = sld [smem:[#allocation2 + $0x83]] }
  0x9c   : > { %s1201_s10 = sld [smem:[#allocation2 + $0x100]]  ;;  %s1204_s7 = sld [smem:[#allocation2 + $0x101]] }
  0x9d   : > { %v301_v6 = vfloor.f32 %v299_v4  ;;  %v302_v7 = vfloor.f32 %v1195_v5  ;;  %s1206_s14 = sld [smem:[#allocation2 + $0x102]]  ;;  %s1208_s8 = sld [smem:[#allocation2 + $0x4]] }
  0x9e   : > { %s1210_s6 = sld [smem:[#allocation2 + $0x180]]  ;;  %s1212_s9 = sld [smem:[#allocation2 + $0x181]]  ;;  %v341_v10 = vstv %s1183_s27  ;;  %v355_v13 = vstv %s1185_s28 }
  0x9f   : > { %vm303_vm0 = vcmp.ge.f32.partialorder %v301_v6, 0.0  ;;  %vm305_vm1 = vcmp.lt.f32.partialorder %v301_v6, 6.0  ;;  %vm304_vm3 = vcmp.ge.f32.partialorder %v302_v7, 0.0  ;;  %vm306_vm4 = vcmp.lt.f32.partialorder %v302_v7, 6.0  ;;  %s1214_s22 = sld [smem:[#allocation2 + $0x182]]  ;;  %s1221_s26 = sld [smem:[#allocation2 + $0x103]] }
  0xa0   : > { %vm307_vm2 = vmand %vm303_vm0, %vm305_vm1  ;;  %s1223_s0 = sld [smem:[#allocation2 + $0x183]]  ;;  %v344_v12 = vstv %s1191_s21  ;;  %v369_v14 = vstv %s1187_s24  ;;  %v383_v15 = vstv %s1189_s25  ;;  %s1233_s1 = sld [smem:[#allocation2 + $0x84]]  ;;  %v358_v19 = vstv %s1193_s29 }
  0xa1   : > { %v309_v8 = vsel %vm307_vm2, %v301_v6, 6.0  ;;  %vm1217_vm5 = vmand %vm304_vm3, %vm306_vm4  ;;  %s1235_s2 = sld [smem:[#allocation2 + $0x104]]  ;;  %s1239_s3 = sld [smem:[#allocation2 + $0x105]]  ;;  %v372_v21 = vstv %s1197_s23  ;;  %v386_v22 = vstv %s1199_s13 }
  0xa2   : > { %v637_v9 = vtrunc.f32 %v309_v8  ;;  %v1231_v17 = vsub.f32 %v299_v4, %v309_v8  ;;  %v347_v18 = vstv %s1201_s10  ;;  %s1241_s30 = sld [smem:[#allocation2 + $0x184]]  ;;  %v361_v20 = vstv %s1204_s7  ;;  %s1250_s19 = sld [smem:[#allocation2 + $0x85]] }
  0xa3   : > { %v1248_v23 = vsel %vm1217_vm5, %v302_v7, 6.0  ;;  %v375_v24 = vstv %s1206_s14  ;;  %s1256_s10 = sld [smem:[#allocation2 + $0x185]]  ;;  %v397_v51 = vstv %s1208_s8 }
  0xa4   : > { %v1229_v16 = vcvt.f32.s32 %v637_v9  ;;  %v350_v28 = vstv %s1210_s6  ;;  %s1263_s11 = sld [smem:[#allocation2 + $0x5]]  ;;  %v364_v33 = vstv %s1212_s9  ;;  %v639_v39 = vtrunc.f32 %v1248_v23 }
  0xa5   : > { %v378_v38 = vstv %s1214_s22  ;;  %v389_v41 = vstv %s1221_s26  ;;  %s452_s26 = scalar_lea.sflag [#allocation4], %s1169_s12 }
  0xa6   : > { %vm339_vm6 = vcmp.eq.s32.totalorder %v1229_v16, 0  ;;  %vm353_vm7 = vcmp.eq.s32.totalorder %v1229_v16, 1  ;;  %vm367_vm8 = vcmp.eq.s32.totalorder %v1229_v16, 2  ;;  %vm381_vm9 = vcmp.eq.s32.totalorder %v1229_v16, 3 }
  0xa7   : > { %v342_v25 = vsel %vm339_vm6, %v341_v10, 0.0  ;;  %v345_v26 = vsel %vm339_vm6, %v344_v12, 0.0  ;;  %v348_v27 = vsel %vm339_vm6, %v347_v18, 0.0  ;;  %v351_v29 = vsel %vm339_vm6, %v350_v28, 0.0 }
  0xa8   : > { %v356_v30 = vsel %vm353_vm7, %v355_v13, %v342_v25  ;;  %v359_v31 = vsel %vm353_vm7, %v358_v19, %v345_v26  ;;  %v362_v32 = vsel %vm353_vm7, %v361_v20, %v348_v27  ;;  %v365_v36 = vsel %vm353_vm7, %v364_v33, %v351_v29 }
  0xa9   : > { %v373_v34 = vsel %vm367_vm8, %v372_v21, %v359_v31  ;;  %v376_v35 = vsel %vm367_vm8, %v375_v24, %v362_v32  ;;  %v370_v37 = vsel %vm367_vm8, %v369_v14, %v356_v30  ;;  %v379_v40 = vsel %vm367_vm8, %v378_v38, %v365_v36  ;;  %v435_v30 = vld [vmem:[#allocation7] sm:$0xff] }
  0xaa   : > { %v392_v42 = vstv %s1223_s0  ;;  %vm395_vm10 = vcmp.eq.s32.totalorder %v1229_v16, 4  ;;  %v387_v43 = vsel %vm381_vm9, %v386_v22, %v373_v34  ;;  %v390_v44 = vsel %vm381_vm9, %v389_v41, %v376_v35  ;;  %s1480_s0 = sshll.u32 %s1169_s12, 4 }
  0xab   : > { %v393_v45 = vsel %vm381_vm9, %v392_v42, %v379_v40  ;;  %v400_v46 = vstv %s1233_s1  ;;  %v403_v47 = vstv %s1235_s2  ;;  %v406_v48 = vstv %s1241_s30  ;;  %s290_s1 = scalar_lea.vmem [#allocation10], %s1480_s0 }
  0xac   : > { %vm409_vm11 = vcmp.eq.s32.totalorder %v1229_v16, 5  ;;  %v417_v49 = vstv %s1239_s3  ;;  %v384_v50 = vsel %vm381_vm9, %v383_v15, %v370_v37  ;;  %v404_v52 = vsel %vm395_vm10, %v403_v47, %v390_v44  ;;  %s467_s2 = sshll.u32 %s290_s1, 4  ;;  %s636_s3 = sshll.u32 %s919_s18, 8  ;;  %s1386_s2 = int_to_ptr.vmem [resolvable:$true] %s467_s2 }
  0xad   : > { %v407_v53 = vsel %vm395_vm10, %v406_v48, %v393_v45  ;;  %v401_v54 = vsel %vm395_vm10, %v400_v46, %v387_v43  ;;  %v414_v55 = vstv %s1250_s19  ;;  %v420_v56 = vstv %s1256_s10  ;;  %v436_v45 = vld [vmem:[#allocation7 + $0x8] sm:$0xff]  ;;  %s837_s27 = scalar_lea.vmem %s1386_s2, 256  ;;  %s935_s18 = smov [#allocation10]  }
  0xae   : > { %v640_v57 = vcvt.f32.s32 %v639_v39  ;;  %v411_v58 = vstv %s1263_s11  ;;  %v418_v59 = vsel %vm409_vm11, %v417_v49, %v404_v52  ;;  %v421_v60 = vsel %vm409_vm11, %v420_v56, %v407_v53  ;;  %s1391_s11 = scalar_lea.hbm %s1444_s4, %s636_s3  ;;  %p838_p12 = scmp.ne.s32.totalorder %s1386_s2, %s837_s27 }
  0xaf   : > { %v398_v62 = vsel %vm395_vm10, %v397_v51, %v384_v50  ;;  %v423_v63 = vmul.f32 %v421_v60, %v1231_v17  ;;  %v415_v0 = vsel %vm409_vm11, %v414_v55, %v401_v54  ;;  %v441_v6 = vshra.s32 %v439_v61, %v1229_v16  ;;  %s841_s28 = sshll.u32 %s935_s18, 4  ;;  %s842_s28 = int_to_ptr.vmem [resolvable:$false] %s841_s28 }
  0xb0   : > { %vm340_vm12 = vcmp.eq.s32.totalorder %v640_v57, 0  ;;  %vm354_vm13 = vcmp.eq.s32.totalorder %v640_v57, 1  ;;  %vm368_vm14 = vcmp.eq.s32.totalorder %v640_v57, 2  ;;  %vm382_vm15 = vcmp.eq.s32.totalorder %v640_v57, 3  ;;  %p839_p0 = pnand %p838_p12, %p1104_p3  ;;  %s843_s24 = scalar_lea.vmem %s842_s28, 512 }
  0xb1   : > { %v346_v1 = vsel %vm340_vm12, %v344_v12, 0.0  ;;  %v349_v2 = vsel %vm340_vm12, %v347_v18, 0.0  ;;  %v352_v3 = vsel %vm340_vm12, %v350_v28, 0.0  ;;  %v425_v4 = vadd.f32 %v423_v63, %v418_v59  ;;  %p844_p7 = scmp.lt.s32.totalorder %s1386_s2, %s842_s28  ;;  %p845_p9 = scmp.lt.s32.totalorder %s843_s24, %s837_s27 }
  0xb2   : > { %v343_v7 = vsel %vm340_vm12, %v341_v10, 0.0  ;;  %v360_v8 = vsel %vm354_vm13, %v358_v19, %v346_v1  ;;  %v363_v9 = vsel %vm354_vm13, %v361_v20, %v349_v2  ;;  %v366_v11 = vsel %vm354_vm13, %v364_v33, %v352_v3  ;;  %p840_p5 = pneg %p839_p0 }
  0xb3   : > { %v427_v12 = vmul.f32 %v425_v4, %v1231_v17  ;;  %v314_v18 = vsub.f32 %v1195_v5, %v1248_v23  ;;  %v374_v10 = vsel %vm368_vm14, %v372_v21, %v360_v8  ;;  %v377_v19 = vsel %vm368_vm14, %v375_v24, %v363_v9  ;;  %p846_p1 = por %p845_p9, %p844_p7 }
  0xb4   : > { %v412_v20 = vsel %vm409_vm11, %v411_v58, %v398_v62  ;;  %v357_v25 = vsel %vm354_vm13, %v355_v13, %v343_v7  ;;  %v380_v26 = vsel %vm368_vm14, %v378_v38, %v366_v11  ;;  %v391_v27 = vsel %vm382_vm15, %v389_v41, %v377_v19 }
  0xb5   : > { %v429_v28 = vadd.f32 %v427_v12, %v415_v0  ;;  %v394_v5 = vsel %vm382_vm15, %v392_v42, %v380_v26  ;;  %vm396_vm0 = vcmp.eq.s32.totalorder %v640_v57, 4  ;;  %vm410_vm1 = vcmp.eq.s32.totalorder %v640_v57, 5  ;;  %p847_p4 = pnand %p846_p1, %p840_p5 }
  0xb6   : > { %v443_v21 = vand.u32 1, %v441_v6  ;;  %v388_v23 = vsel %vm382_vm15, %v386_v22, %v374_v10  ;;  %v405_v16 = vsel %vm396_vm0, %v403_v47, %v391_v27  ;;  %v408_v24 = vsel %vm396_vm0, %v406_v48, %v394_v5  ;;  %v440_v22 = vld [vmem:[#allocation9 + $0x8] sm:$0xff] }
  0xb7   : > { %v431_v13 = vmul.f32 %v429_v28, %v1231_v17  ;;  %v371_v29 = vsel %vm368_vm14, %v369_v14, %v357_v25  ;;  %v419_v31 = vsel %vm410_vm1, %v417_v49, %v405_v16  ;;  %v422_v32 = vsel %vm410_vm1, %v420_v56, %v408_v24 }
  0xb8   : > { %v402_v34 = vsel %vm396_vm0, %v400_v46, %v388_v23  ;;  %v424_v35 = vmul.f32 %v422_v32, %v314_v18  ;;  %vm445_vm2 = vcmp.ne.s32.totalorder %v443_v21, 0  ;;  %v385_v36 = vsel %vm382_vm15, %v383_v15, %v371_v29 }
  0xb9   : > { %v433_v33 = vadd.f32 %v431_v13, %v412_v20  ;;  %v416_v14 = vsel %vm410_vm1, %v414_v55, %v402_v34  ;;  %v442_v38 = vshra.s32 %v440_v22, %v640_v57  ;;  %v399_v40 = vsel %vm396_vm0, %v397_v51, %v385_v36 }
  0xba   : > { %v426_v17 = vadd.f32 %v424_v35, %v419_v31  ;;  %v413_v43 = vsel %vm410_vm1, %v411_v58, %v399_v40 }
  0xbb   : > { %v437_v37 = vmul.f32 %v435_v30, %v433_v33  ;;  %v444_v44 = vand.u32 1, %v442_v38 }
  0xbc   : > { %v428_v41 = vmul.f32 %v426_v17, %v314_v18 }
  0xbd   : > { %v447_v39 = vsel %vm445_vm2, %v437_v37, nan  ;;  %vm446_vm3 = vcmp.ne.s32.totalorder %v444_v44, 0 }
  0xbe   : > { %449 = vst [vmem:[%s290_s1] sm:$0xff] %v447_v39  ;;  %v430_v42 = vadd.f32 %v428_v41, %v416_v14 }
  0xc0   : > { %v432_v15 = vmul.f32 %v430_v42, %v314_v18 }
  0xc2   : > { %v434_v46 = vadd.f32 %v432_v15, %v413_v43 }
  0xc4   : > { %v438_v47 = vmul.f32 %v436_v45, %v434_v46 }
  0xc6   : > { %v448_v48 = vsel %vm446_vm3, %v438_v47, nan }
  0xc7   : > { %450 = vst [vmem:[%s290_s1 + $0x8] sm:$0xff] %v448_v48 }
  0xc8   : > { %850 = shalt.err (!%p847_p4)
}
  0xc9   : > { %s851_s25 = scalar_lea.hbm %s1391_s11, 256  ;;  %s855_s23 = scalar_lea.hbm %s1444_s4, 512 }
  0xca   : > { %p852_p8 = scmp.ne.s32.totalorder %s1391_s11, %s851_s25  ;;  %p856_p2 = scmp.lt.u32.totalorder %s1391_s11, %s1444_s4 }
  0xcb   : > { %p857_p6 = scmp.lt.u32.totalorder %s855_s23, %s851_s25  ;;  %p859_p12 = scmp.lt.u32.totalorder %s851_s25, %s1391_s11 }
  0xcc   : > { %p853_p13 = pnand %p852_p8, %p1104_p3 }
  0xcd   : > { %p858_p11 = por %p857_p6, %p856_p2 }
  0xce   : > { %p854_p10 = pneg %p853_p13 }
  0xcf   : > { %p860_p0 = por %p859_p12, %p858_p11 }
  0xd1   : > { %p861_p5 = pnand %p860_p0, %p854_p10 }
  0xd3   : > { %864 = shalt.err (!%p861_p5)
}
  0xd4   : > { %s936_s14 = smov 128   ;;  %s937_s8 = smov 8  }
  0xd5   : > { %655 = dma.vmem_to_hbm [thread:$0]  (%p1104_p3), %s1386_s2, 256, %s1391_s11, %s452_s26, %s936_s14, %s936_s14, %s937_s8  }
  0xd6 PF: > { %s1481_s6 = sld [smem:[#allocation16_spill]]  ;;  %s482_s9 = sand.u32 1, %s907_s15  }
  0xd7   : > { %p1483_p9 = scmp.ge.s32.totalorder %s927_s20, 2  ;;  %s483_s22 = scalar_lea.sflag [#allocation4], %s482_s9 }
  0xdc   : > { %p1482_p7 = scmp.ne.s32.totalorder %s1481_s6, 0 }
  0xde   : > { %p672_p1 = pnand %p1483_p9, %p1482_p7 }
  0xe0   : > { %902 = dma.done.wait (!%p672_p1), %s483_s22, 256  }
  0xe1   : > { %904 = vsyncadd (!%p672_p1), %s483_s22, 4294967040  ;;  %s22_s20 = sadd.s32 1, %s927_s20   ;;  %s1484_s10 = sld [smem:[#allocation18_spill]] }
  0xe2   : > { %p19_p4 = scmp.ge.s32.totalorder %s22_s20, 4   ;;  %s1485_s18 = sld [smem:[#allocation15_spill]] }
  0xe3   : > { %s1486_s19 = sld [smem:[#allocation17_spill]]  ;;  %s1487_s15 = smov %s911_s16 }
  0xe4   : > { %s1488_s16 = smov %s915_s17  ;;  %21 = sbr.rel (!%p19_p4) target bundleno = 13 (0xd), region = 96 }
  0xe7   : > { %s1489_s17 = smov %s1484_s10 }
  0xeb   :  { %488 = vsyncpa [#allocation3], 1 }
  0xec   :  { %490 = vsyncpa [#allocation3 + $0x1], 1 }
  0xed   :  { %491 = vsyncpa [#allocation8], 1 }
  0xee   :  { %492 = vsyncpa [#allocation4], 1 }
  0xef   :  { %494 = vsyncpa [#allocation4 + $0x1], 1 }
  0xf0   :  { %495 = vsyncpa [#allocation5], 1 }
  0xf1   :  { %497 = vsyncpa [#allocation5 + $0x1], 1 }

</bundles_post_ra>
